<compile_context>
chip_gen: v7x
topology: tpu7x:2x2x1
jax: 0.10.0
libtpu: 0.0.40
codegen_flags: <defaults>
</compile_context>

<pallas_src>
import functools

import jax
import jax.numpy as jnp
from jax.experimental import pallas as pl
from jax.experimental.pallas import tpu as pltpu

NCLASS = 6
_LANE = 128
_MAX_TILE_R = 2048   # 2048 rows x 128 lanes x 4 B = 1 MiB per target tile (x2 double-buffered)
_MIN_TILE_R = 256


def _se_loss_kernel(pred_ref, tgt_ref, out_ref, acc_ref, *, nclass):
    r = pl.program_id(1)
    last_r = pl.num_programs(1) - 1

    @pl.when(r == 0)
    def _init():
        acc_ref[...] = jnp.zeros_like(acc_ref)

    t = tgt_ref[0]  # (TILE_R, 128) int32 labels for this batch element / row chunk

    # Class-presence for this tile.  Out-of-range labels (including the padding value
    # `nclass`) never match any class, reproducing torch.histc's ignore-out-of-range
    # behavior.
    # TODO(synk): a single-pass `1 << label` bitmask with a bitwise-OR reduction would cut
    # per-element VPU work ~3x, but OR-reductions are not a guaranteed Mosaic lowering, so
    # the per-class compare (known-good lowering) is kept.
    hits = []
    for c in range(nclass):
        hit = jnp.max(jnp.where(t == c, 1.0, 0.0))      # 1.0 iff class c appears in tile
        hits.append(jnp.reshape(hit, (1, 1)))
    acc_ref[...] = jnp.maximum(acc_ref[...], jnp.concatenate(hits, axis=1))

    # BCE for this batch element, computed once (on its last row chunk only).
    @pl.when(r == last_r)
    def _finalize():
        p = pred_ref[0]                                  # (1, C) probabilities
        tv = acc_ref[...]                                # (1, C) presence in {0, 1}
        log_p = jnp.maximum(jnp.log(p), -100.0)          # PyTorch BCELoss log clamp
        log_1mp = jnp.maximum(jnp.log(1.0 - p), -100.0)
        bce = -(tv * log_p + (1.0 - tv) * log_1mp)
        out_ref[...] = jnp.reshape(jnp.sum(bce), (1, 1, 1))


def _plan_rows(num_rows):
    """Pick a row-tile size and (possibly padded) row count.

    Single chunk when small (block == full dim is always a legal BlockSpec); otherwise a
    multiple-of-8 divisor of the row count; only pads (rare) when no decent divisor exists.
    """
    if num_rows <= _MAX_TILE_R:
        return num_rows, num_rows
    t = _MAX_TILE_R
    while t >= _MIN_TILE_R:
        if num_rows % t == 0:
            return t, num_rows
        t -= 8
    t = _MAX_TILE_R
    padded = -(-num_rows // t) * t
    return t, padded


def se_loss(se_pred, target, *, nclass=NCLASS):
    """se_pred: (B, nclass) probabilities in (0,1); target: (B, ...) integer class labels."""
    se_pred = jnp.asarray(se_pred)
    target = jnp.asarray(target)
    B, C = se_pred.shape
    assert C == nclass

    # Keep labels as narrow integers end-to-end (no float copy of the big map).
    flat = target.reshape(B, -1)
    if flat.dtype != jnp.int32:
        flat = flat.astype(jnp.int32)
    n = flat.shape[1]

    # Lane-pack the label map as (B, R, 128) so vregs are full regardless of B.
    # Any padding uses `nclass`, an out-of-range (ignored) label.
    if n % _LANE:
        flat = jnp.pad(flat, ((0, 0), (0, _LANE - n % _LANE)), constant_values=nclass)
    rows = flat.shape[1] // _LANE
    tile_r, rows_p = _plan_rows(rows)
    tgt = flat.reshape(B, rows, _LANE)
    if rows_p != rows:
        tgt = jnp.pad(tgt, ((0, 0), (0, rows_p - rows), (0, 0)), constant_values=nclass)

    pred = se_pred.astype(jnp.float32).reshape(B, 1, C)
    grid = (B, rows_p // tile_r)

    kernel = functools.partial(_se_loss_kernel, nclass=nclass)
    per_batch = pl.pallas_call(
        kernel,
        out_shape=jax.ShapeDtypeStruct((B, 1, 1), jnp.float32),
        grid_spec=pltpu.PrefetchScalarGridSpec(
            num_scalar_prefetch=0,
            grid=grid,
            in_specs=[
                pl.BlockSpec((1, 1, C), lambda b, r: (b, 0, 0)),           # tiny pred row
                pl.BlockSpec((1, tile_r, _LANE), lambda b, r: (b, r, 0)),  # label tile
            ],
            out_specs=pl.BlockSpec((1, 1, 1), lambda b, r: (b, 0, 0)),
            scratch_shapes=[pltpu.VMEM((1, nclass), jnp.float32)],         # presence acc
        ),
        compiler_params=pltpu.CompilerParams(
            dimension_semantics=("parallel", "arbitrary"),
            vmem_limit_bytes=32 * 1024 * 1024,
        ),
    )(pred, tgt)

    # Trivial finish: mean over (B, nclass).
    return jnp.sum(per_batch) / (B * C)


def _reference(se_pred, target):
    # pure-JAX reference for the self-check
    B, C = se_pred.shape
    tgt = target.reshape(B, -1)
    se_tgt = jnp.stack(
        [jnp.any(tgt == c, axis=1).astype(jnp.float32) for c in range(C)], axis=1
    )
    log_p = jnp.maximum(jnp.log(se_pred), -100.0)
    log_1mp = jnp.maximum(jnp.log(1.0 - se_pred), -100.0)
    return jnp.mean(-(se_tgt * log_p + (1.0 - se_tgt) * log_1mp))


if __name__ == "__main__":
    key = jax.random.PRNGKey(0)
    k1, k2 = jax.random.split(key)

    B, H, W = 2, 16, 16
    # se_pred: probabilities in (0, 1), shape (B, 6)
    se_pred = jax.nn.sigmoid(jax.random.normal(k1, (B, NCLASS), dtype=jnp.float32))
    # target: integer class labels in [0, 5], shape (B, H, W) — stays int32 (no float copy)
    target = jax.random.randint(k2, (B, H, W), 0, NCLASS)

    loss = se_loss(se_pred, target)
    jax.block_until_ready(loss)

    ref = _reference(se_pred, target)
    assert jnp.allclose(loss, ref, atol=1e-5, rtol=1e-5), (loss, ref)

    print("KERNEL_OK")
</pallas_src>

<mosaic_0001>
module attributes {stable_mosaic.version = 11 : i64} {
  func.func @_se_loss_kernel(%arg0: i32, %arg1: i32, %arg2: memref<1x1x6xf32, #tpu.memory_space<vmem>>, %arg3: memref<1x2x128xi32, #tpu.memory_space<vmem>>, %arg4: memref<1x1x1xf32, #tpu.memory_space<vmem>>, %arg5: memref<1x6xf32, #tpu.memory_space<vmem>>) attributes {dimension_semantics = [#tpu.dimension_semantics<parallel>, #tpu.dimension_semantics<arbitrary>], iteration_bounds = array<i64: 2, 1>, scalar_prefetch = 0 : i64, scratch_operands = 1 : i64, tpu.core_type = #tpu.core_type<tc>, window_params = [{transform_indices = @transform_0, window_bounds = array<i64: 1, 1, 6>}, {transform_indices = @transform_1, window_bounds = array<i64: 1, 2, 128>}, {transform_indices = @transform_2, window_bounds = array<i64: 1, 1, 1>}]} {
    %c0_i32 = arith.constant 0 : i32
    %0 = arith.cmpi eq, %arg1, %c0_i32 : i32
    %1 = arith.extui %0 : i1 to i32
    %c0_i32_0 = arith.constant 0 : i32
    %2 = arith.cmpi ne, %1, %c0_i32_0 : i32
    scf.if %2 {
      %cst_27 = arith.constant 0.000000e+00 : f32
      %72 = vector.broadcast %cst_27 : f32 to vector<1x6xf32>
      %c0_28 = arith.constant 0 : index
      %c0_29 = arith.constant 0 : index
      %73 = vector.load %arg5[%c0_28, %c0_29] : memref<1x6xf32, #tpu.memory_space<vmem>>, vector<1x6xf32>
      tpu.vector_store %arg5[%c0_28, %c0_29], %72 {strides = array<i32>} : memref<1x6xf32, #tpu.memory_space<vmem>>, vector<1x6xf32>,
    } else {
    }
    %c0 = arith.constant 0 : index
    %c0_1 = arith.constant 0 : index
    %c0_2 = arith.constant 0 : index
    %3 = vector.load %arg3[%c0, %c0_1, %c0_2] : memref<1x2x128xi32, #tpu.memory_space<vmem>>, vector<1x2x128xi32>
    %4 = vector.shape_cast %3 : vector<1x2x128xi32> to vector<2x128xi32>
    %c0_i32_3 = arith.constant 0 : i32
    %5 = vector.broadcast %c0_i32_3 : i32 to vector<2x128xi32>
    %6 = arith.cmpi eq, %4, %5 : vector<2x128xi32>
    %cst = arith.constant 1.000000e+00 : f32
    %cst_4 = arith.constant 0.000000e+00 : f32
    %7 = vector.broadcast %cst : f32 to vector<2x128xf32>
    %8 = vector.broadcast %cst_4 : f32 to vector<2x128xf32>
    %9 = arith.select %6, %7, %8 : vector<2x128xi1>, vector<2x128xf32>
    %10 = vector.shape_cast %9 : vector<2x128xf32> to vector<1x2x128xf32>
    %cst_5 = arith.constant dense<0xFF800000> : vector<1xf32>
    %11 = vector.multi_reduction <maximumf>, %10, %cst_5 [1, 2] : vector<1x2x128xf32> to vector<1xf32>
    %12 = vector.shape_cast %11 : vector<1xf32> to vector<1x1x1xf32>
    %13 = vector.extract %12[0, 0, 0] : f32 from vector<1x1x1xf32>
    %14 = vector.broadcast %13 : f32 to vector<1x1xf32>
    %c1_i32 = arith.constant 1 : i32
    %15 = vector.broadcast %c1_i32 : i32 to vector<2x128xi32>
    %16 = arith.cmpi eq, %4, %15 : vector<2x128xi32>
    %cst_6 = arith.constant 1.000000e+00 : f32
    %cst_7 = arith.constant 0.000000e+00 : f32
    %17 = vector.broadcast %cst_6 : f32 to vector<2x128xf32>
    %18 = vector.broadcast %cst_7 : f32 to vector<2x128xf32>
    %19 = arith.select %16, %17, %18 : vector<2x128xi1>, vector<2x128xf32>
    %20 = vector.shape_cast %19 : vector<2x128xf32> to vector<1x2x128xf32>
    %cst_8 = arith.constant dense<0xFF800000> : vector<1xf32>
    %21 = vector.multi_reduction <maximumf>, %20, %cst_8 [1, 2] : vector<1x2x128xf32> to vector<1xf32>
    %22 = vector.shape_cast %21 : vector<1xf32> to vector<1x1x1xf32>
    %23 = vector.extract %22[0, 0, 0] : f32 from vector<1x1x1xf32>
    %24 = vector.broadcast %23 : f32 to vector<1x1xf32>
    %c2_i32 = arith.constant 2 : i32
    %25 = vector.broadcast %c2_i32 : i32 to vector<2x128xi32>
    %26 = arith.cmpi eq, %4, %25 : vector<2x128xi32>
    %cst_9 = arith.constant 1.000000e+00 : f32
    %cst_10 = arith.constant 0.000000e+00 : f32
    %27 = vector.broadcast %cst_9 : f32 to vector<2x128xf32>
    %28 = vector.broadcast %cst_10 : f32 to vector<2x128xf32>
    %29 = arith.select %26, %27, %28 : vector<2x128xi1>, vector<2x128xf32>
    %30 = vector.shape_cast %29 : vector<2x128xf32> to vector<1x2x128xf32>
    %cst_11 = arith.constant dense<0xFF800000> : vector<1xf32>
    %31 = vector.multi_reduction <maximumf>, %30, %cst_11 [1, 2] : vector<1x2x128xf32> to vector<1xf32>
    %32 = vector.shape_cast %31 : vector<1xf32> to vector<1x1x1xf32>
    %33 = vector.extract %32[0, 0, 0] : f32 from vector<1x1x1xf32>
    %34 = vector.broadcast %33 : f32 to vector<1x1xf32>
    %c3_i32 = arith.constant 3 : i32
    %35 = vector.broadcast %c3_i32 : i32 to vector<2x128xi32>
    %36 = arith.cmpi eq, %4, %35 : vector<2x128xi32>
    %cst_12 = arith.constant 1.000000e+00 : f32
    %cst_13 = arith.constant 0.000000e+00 : f32
    %37 = vector.broadcast %cst_12 : f32 to vector<2x128xf32>
    %38 = vector.broadcast %cst_13 : f32 to vector<2x128xf32>
    %39 = arith.select %36, %37, %38 : vector<2x128xi1>, vector<2x128xf32>
    %40 = vector.shape_cast %39 : vector<2x128xf32> to vector<1x2x128xf32>
    %cst_14 = arith.constant dense<0xFF800000> : vector<1xf32>
    %41 = vector.multi_reduction <maximumf>, %40, %cst_14 [1, 2] : vector<1x2x128xf32> to vector<1xf32>
    %42 = vector.shape_cast %41 : vector<1xf32> to vector<1x1x1xf32>
    %43 = vector.extract %42[0, 0, 0] : f32 from vector<1x1x1xf32>
    %44 = vector.broadcast %43 : f32 to vector<1x1xf32>
    %c4_i32 = arith.constant 4 : i32
    %45 = vector.broadcast %c4_i32 : i32 to vector<2x128xi32>
    %46 = arith.cmpi eq, %4, %45 : vector<2x128xi32>
    %cst_15 = arith.constant 1.000000e+00 : f32
    %cst_16 = arith.constant 0.000000e+00 : f32
    %47 = vector.broadcast %cst_15 : f32 to vector<2x128xf32>
    %48 = vector.broadcast %cst_16 : f32 to vector<2x128xf32>
    %49 = arith.select %46, %47, %48 : vector<2x128xi1>, vector<2x128xf32>
    %50 = vector.shape_cast %49 : vector<2x128xf32> to vector<1x2x128xf32>
    %cst_17 = arith.constant dense<0xFF800000> : vector<1xf32>
    %51 = vector.multi_reduction <maximumf>, %50, %cst_17 [1, 2] : vector<1x2x128xf32> to vector<1xf32>
    %52 = vector.shape_cast %51 : vector<1xf32> to vector<1x1x1xf32>
    %53 = vector.extract %52[0, 0, 0] : f32 from vector<1x1x1xf32>
    %54 = vector.broadcast %53 : f32 to vector<1x1xf32>
    %c5_i32 = arith.constant 5 : i32
    %55 = vector.broadcast %c5_i32 : i32 to vector<2x128xi32>
    %56 = arith.cmpi eq, %4, %55 : vector<2x128xi32>
    %cst_18 = arith.constant 1.000000e+00 : f32
    %cst_19 = arith.constant 0.000000e+00 : f32
    %57 = vector.broadcast %cst_18 : f32 to vector<2x128xf32>
    %58 = vector.broadcast %cst_19 : f32 to vector<2x128xf32>
    %59 = arith.select %56, %57, %58 : vector<2x128xi1>, vector<2x128xf32>
    %60 = vector.shape_cast %59 : vector<2x128xf32> to vector<1x2x128xf32>
    %cst_20 = arith.constant dense<0xFF800000> : vector<1xf32>
    %61 = vector.multi_reduction <maximumf>, %60, %cst_20 [1, 2] : vector<1x2x128xf32> to vector<1xf32>
    %62 = vector.shape_cast %61 : vector<1xf32> to vector<1x1x1xf32>
    %63 = vector.extract %62[0, 0, 0] : f32 from vector<1x1x1xf32>
    %64 = vector.broadcast %63 : f32 to vector<1x1xf32>
    %c0_21 = arith.constant 0 : index
    %c0_22 = arith.constant 0 : index
    %65 = vector.load %arg5[%c0_21, %c0_22] : memref<1x6xf32, #tpu.memory_space<vmem>>, vector<1x6xf32>
    %66 = tpu.concatenate %14, %24, %34, %44, %54, %64 in 1 : vector<1x1xf32>, vector<1x1xf32>, vector<1x1xf32>, vector<1x1xf32>, vector<1x1xf32>, vector<1x1xf32> -> vector<1x6xf32>
    %67 = arith.maximumf %65, %66 : vector<1x6xf32>
    %c0_23 = arith.constant 0 : index
    %c0_24 = arith.constant 0 : index
    %68 = vector.load %arg5[%c0_23, %c0_24] : memref<1x6xf32, #tpu.memory_space<vmem>>, vector<1x6xf32>
    tpu.vector_store %arg5[%c0_23, %c0_24], %67 {strides = array<i32>} : memref<1x6xf32, #tpu.memory_space<vmem>>, vector<1x6xf32>,
    %c0_i32_25 = arith.constant 0 : i32
    %69 = arith.cmpi eq, %arg1, %c0_i32_25 : i32
    %70 = arith.extui %69 : i1 to i32
    %c0_i32_26 = arith.constant 0 : i32
    %71 = arith.cmpi ne, %70, %c0_i32_26 : i32
    scf.if %71 {
      %c0_27 = arith.constant 0 : index
      %c0_28 = arith.constant 0 : index
      %c0_29 = arith.constant 0 : index
      %72 = vector.load %arg2[%c0_27, %c0_28, %c0_29] : memref<1x1x6xf32, #tpu.memory_space<vmem>>, vector<1x1x6xf32>
      %73 = vector.shape_cast %72 : vector<1x1x6xf32> to vector<1x6xf32>
      %c0_30 = arith.constant 0 : index
      %c0_31 = arith.constant 0 : index
      %74 = vector.load %arg5[%c0_30, %c0_31] : memref<1x6xf32, #tpu.memory_space<vmem>>, vector<1x6xf32>
      %75 = math.log %73 : vector<1x6xf32>
      %cst_32 = arith.constant -1.000000e+02 : f32
      %76 = vector.broadcast %cst_32 : f32 to vector<1x6xf32>
      %77 = arith.maximumf %75, %76 : vector<1x6xf32>
      %cst_33 = arith.constant 1.000000e+00 : f32
      %78 = vector.broadcast %cst_33 : f32 to vector<1x6xf32>
      %79 = arith.subf %78, %73 : vector<1x6xf32>
      %80 = math.log %79 : vector<1x6xf32>
      %cst_34 = arith.constant -1.000000e+02 : f32
      %81 = vector.broadcast %cst_34 : f32 to vector<1x6xf32>
      %82 = arith.maximumf %80, %81 : vector<1x6xf32>
      %83 = arith.mulf %74, %77 : vector<1x6xf32>
      %cst_35 = arith.constant 1.000000e+00 : f32
      %84 = vector.broadcast %cst_35 : f32 to vector<1x6xf32>
      %85 = arith.subf %84, %74 : vector<1x6xf32>
      %86 = arith.mulf %85, %82 : vector<1x6xf32>
      %87 = arith.addf %83, %86 : vector<1x6xf32>
      %cst_36 = arith.constant 0.000000e+00 : f32
      %88 = vector.broadcast %cst_36 : f32 to vector<1x6xf32>
      %89 = arith.subf %88, %87 : vector<1x6xf32>
      %90 = vector.shape_cast %89 : vector<1x6xf32> to vector<1x1x6xf32>
      %cst_37 = arith.constant dense<0.000000e+00> : vector<1xf32>
      %91 = vector.multi_reduction <add>, %90, %cst_37 [1, 2] : vector<1x1x6xf32> to vector<1xf32>
      %92 = vector.shape_cast %91 : vector<1xf32> to vector<1x1x1xf32>
      %93 = vector.extract %92[0, 0, 0] : f32 from vector<1x1x1xf32>
      %94 = vector.broadcast %93 : f32 to vector<1x1x1xf32>
      %c0_38 = arith.constant 0 : index
      %c0_39 = arith.constant 0 : index
      %c0_40 = arith.constant 0 : index
      %95 = vector.load %arg4[%c0_38, %c0_39, %c0_40] : memref<1x1x1xf32, #tpu.memory_space<vmem>>, vector<1x1x1xf32>
      tpu.vector_store %arg4[%c0_38, %c0_39, %c0_40], %94 {strides = array<i32>} : memref<1x1x1xf32, #tpu.memory_space<vmem>>, vector<1x1x1xf32>,
    } else {
    }
    return
  }
  func.func @transform_0(%arg0: i32, %arg1: i32) -> (i32, i32, i32) {
    %c0_i32 = arith.constant 0 : i32
    %c0_i32_0 = arith.constant 0 : i32
    %c0_i32_1 = arith.constant 0 : i32
    return %arg0, %c0_i32, %c0_i32_0 : i32, i32, i32
  }
  func.func @transform_1(%arg0: i32, %arg1: i32) -> (i32, i32, i32) {
    %c0_i32 = arith.constant 0 : i32
    %c0_i32_0 = arith.constant 0 : i32
    return %arg0, %arg1, %c0_i32 : i32, i32, i32
  }
  func.func @transform_2(%arg0: i32, %arg1: i32) -> (i32, i32, i32) {
    %c0_i32 = arith.constant 0 : i32
    %c0_i32_0 = arith.constant 0 : i32
    %c0_i32_1 = arith.constant 0 : i32
    return %arg0, %c0_i32, %c0_i32_0 : i32, i32, i32
  }
}

</mosaic_0001>

<bundles_post_ra>
// kernel: tpu_custom_call.1
= control target key start
LH: loop header
LB: loop body
LE: loop exit
PB: predicated region body
PF: predicated region fallthrough
CT: control target
= control target key end

     0   :  { %7 = vsyncpa [#allocation4], 0  ;;  %s831_s0 = inlined_call_operand.hbm [shape: f32[2,1,6], index: 0, kind: input, shape index: {}]   ;;  %s832_s1 = inlined_call_operand.hbm [shape: s32[2,2,128], index: 1, kind: input, shape index: {}]   ;;  %s833_s2 = inlined_call_operand.vmem [shape: f32[2,1,1], index: 2, kind: output, shape index: {}]  }
   0x1   :  { %9 = vsyncpa [#allocation4 + $0x1], 0 }
   0x2   :  { %10 = vsyncpa [#allocation6], 0 }
   0x3   :  { %12 = vsyncpa [#allocation6 + $0x1], 0  ;;  %s648_s9 = smov 0   ;;  %s650_s10 = smov 0  }
   0x4   :  { %s652_s11 = smov 0   ;;  %s654_s12 = smov 0  }
   0x5   :  { %s656_s13 = smov 0   ;;  %s658_s14 = smov 0  }
   0x6 LB: > { %s424_s15 = sadd.s32 4294967295, %s628_s14   ;;  %s30_s16 = sadd.s32 1, %s624_s13  ;;  %s628_s14 = sphi %s658_s14, %s18_s14   ;;  %s624_s13 = sphi %s656_s13, %s847_s13   ;;  %s620_s12 = sphi %s654_s12, %s846_s12   ;;  %s616_s11 = sphi %s652_s11, %s845_s11   ;;  %s612_s10 = sphi %s650_s10, %s844_s10   ;;  %s608_s9 = sphi %s648_s9, %s843_s9  }
   0x7   : > { %p32_p0 = scmp.ge.s32.totalorder %s30_s16, 2  ;;  %s37_s17 = sadd.s32 1, %s616_s11 }
   0x8   : > { %p44_p1 = scmp.ne.s32.totalorder %s616_s11, %s612_s10  ;;  %p45_p2 = scmp.eq.s32.totalorder %s628_s14, 0 }
   0x9   : > { %s849_s16 = smov (%p32_p0, %s30_s16), 0  ;;  %p50_p4 = scmp.ne.s32.totalorder %s612_s10, %s608_s9 }
   0xa   : > { %p684_p3 = por %p45_p2, %p44_p1  ;;  %s34_s19 = ssub.s32 %s624_s13, %s849_s16 }
   0xb   : > { %p51_p5 = scmp.eq.s32.totalorder %s424_s15, 0  ;;  %p35_p6 = scmp.eq.s32.totalorder %s34_s19, 0 }
   0xc   : > { %p460_p8 = scmp.lt.s32.totalorder %s628_s14, 2  ;;  %s700_s22 = sand.u32 1, %s616_s11  }
   0xd   : > { %p691_p7 = por %p51_p5, %p50_p4  ;;  %s428_s23 = sshll.u32 %s624_s13, 4 }
   0xe   : > { %s697_s21 = scalar_select %p35_p6, %s616_s11, %s37_s17  }
   0xf   : > { %s836_s20 = scalar_select %p691_p7, 1, 0 }
  0x10   : > { %s706_s26 = scalar_lea.hbm %s831_s0, %s428_s23  ;;  %s131_s27 = scalar_lea.vmem [#allocation3], %s700_s22 }
  0x11   : > { %s138_s28 = sshll.u32 %s131_s27, 4  ;;  %p713_p9 = pnand %p460_p8, %p684_p3  ;;  %s709_s28 = int_to_ptr.vmem [resolvable:$true] %s138_s28 }
  0x12   : > { %s129_s30 = scalar_lea.sflag [#allocation4], %s700_s22  ;;  %s514_s3 = scalar_lea.hbm %s706_s26, 16 }
  0x13   : > { %p515_p12 = scmp.ne.s32.totalorder %s706_s26, %s514_s3  ;;  %p516_p13 = pneg %p713_p9 }
  0x14   : > { %s519_s6 = scalar_lea.hbm %s831_s0, 32  ;;  %p520_p2 = scmp.lt.u32.totalorder %s706_s26, %s831_s0 }
  0x15   : > { %p517_p0 = pnand %p516_p13, %p515_p12  ;;  %p521_p3 = scmp.lt.u32.totalorder %s519_s6, %s514_s3 }
  0x16   : > { %p523_p5 = scmp.lt.u32.totalorder %s514_s3, %s706_s26 }
  0x17   : > { %p518_p1 = pneg %p517_p0  ;;  %p522_p4 = por %p521_p3, %p520_p2 }
  0x19   : > { %p524_p6 = por %p523_p5, %p522_p4 }
  0x1b   : > { %p525_p8 = pnand %p524_p6, %p518_p1 }
  0x1d   : > { %528 = shalt.err (!%p525_p8)
}
  0x1e   : > { %s529_s9 = scalar_lea.vmem %s709_s28, 16  ;;  %s630_s15 = smov [#allocation3]  }
  0x1f   : > { %p530_p12 = scmp.ne.s32.totalorder %s709_s28, %s529_s9  ;;  %s534_s17 = sshll.u32 %s630_s15, 4  ;;  %s535_s17 = int_to_ptr.vmem [resolvable:$false] %s534_s17 }
  0x20   : > { %s536_s18 = scalar_lea.vmem %s535_s17, 32  ;;  %p537_p11 = scmp.lt.s32.totalorder %s709_s28, %s535_s17 }
  0x21   : > { %p532_p0 = pnand %p530_p12, %p516_p13  ;;  %p538_p2 = scmp.lt.s32.totalorder %s536_s18, %s529_s9 }
  0x23   : > { %p533_p10 = pneg %p532_p0  ;;  %p539_p3 = por %p538_p2, %p537_p11 }
  0x25   : > { %p540_p4 = pnand %p539_p3, %p533_p10 }
  0x27   : > { %543 = shalt.err (!%p540_p4)
}
  0x28   : > { %456 = dma.hbm_to_vmem [thread:$0]  (!%p713_p9), %s706_s26, 16, %s709_s28, %s129_s30  }
  0x29   : > { %p838_p1 = scmp.lt.s32.totalorder %s628_s14, 3  ;;  %p839_p5 = scmp.ge.s32.totalorder %s628_s14, 1 }
  0x2a   : > { %s429_s23 = sshll.u32 %s700_s22, 1  ;;  %s430_s24 = sshll.u32 %s624_s13, 5 }
  0x2b   : > { %p749_p6 = pnand %p839_p5, %p838_p1  ;;  %s758_s3 = scalar_lea.hbm %s832_s1, %s430_s24 }
  0x2c   : > { %s149_s4 = scalar_lea.vmem [#allocation5], %s429_s23  ;;  %s146_s26 = scalar_lea.sflag [#allocation6], %s700_s22 }
  0x2d   : > { %s840_s19 = scalar_select %p749_p6, 1, 0 }
  0x2e   : > { %s157_s5 = sshll.u32 %s149_s4, 4  ;;  %s544_s28 = scalar_lea.hbm %s758_s3, 32  ;;  %s158_s5 = int_to_ptr.vmem [resolvable:$true] %s157_s5 }
  0x2f   : > { %p545_p10 = scmp.ne.s32.totalorder %s758_s3, %s544_s28  ;;  %s549_s7 = scalar_lea.hbm %s832_s1, 64 }
  0x30   : > { %p550_p12 = scmp.lt.u32.totalorder %s758_s3, %s832_s1  ;;  %p551_p0 = scmp.lt.u32.totalorder %s549_s7, %s544_s28 }
  0x31   : > { %p547_p11 = pnand %p545_p10, %p516_p13  ;;  %p553_p3 = scmp.lt.u32.totalorder %s544_s28, %s758_s3 }
  0x32   : > { %p552_p2 = por %p551_p0, %p550_p12 }
  0x33   : > { %p548_p8 = pneg %p547_p11 }
  0x34   : > { %p554_p4 = por %p553_p3, %p552_p2 }
  0x36   : > { %p555_p1 = pnand %p554_p4, %p548_p8 }
  0x38   : > { %558 = shalt.err (!%p555_p1)
}
  0x39   : > { %s559_s22 = scalar_lea.vmem %s158_s5, 32  ;;  %s631_s15 = smov [#allocation5]  }
  0x3a   : > { %p560_p5 = scmp.ne.s32.totalorder %s158_s5, %s559_s22  ;;  %s564_s17 = sshll.u32 %s631_s15, 4  ;;  %s565_s17 = int_to_ptr.vmem [resolvable:$false] %s564_s17 }
  0x3b   : > { %s566_s18 = scalar_lea.vmem %s565_s17, 64  ;;  %p567_p7 = scmp.lt.s32.totalorder %s158_s5, %s565_s17 }
  0x3c   : > { %p562_p10 = pnand %p560_p5, %p516_p13  ;;  %p568_p6 = scmp.lt.s32.totalorder %s566_s18, %s559_s22 }
  0x3e   : > { %p563_p11 = pneg %p562_p10  ;;  %p569_p0 = por %p568_p6, %p567_p7 }
  0x40   : > { %p570_p12 = pnand %p569_p0, %p563_p11 }
  0x42   : > { %573 = shalt.err (!%p570_p12)
}
  0x43   : > { %459 = dma.hbm_to_vmem [thread:$0]  (!%p713_p9), %s758_s3, 32, %s158_s5, %s146_s26  }
  0x44   : > { %p841_p8 = scmp.ne.s32.totalorder %s840_s19, 0 }
  0x45   : > { %s783_s23 = sand.u32 (!%p841_p8), 1, %s612_s10   ;;  %p842_p13 = scmp.ne.s32.totalorder (!%p841_p8), %s836_s20, 0 }
  0x46   : > { %166 = sbr.rel (%p841_p8) target bundleno = 525 (0x20d), region = 28  ;;  %s169_s24 = scalar_lea.sflag (!%p841_p8), [#allocation4], %s783_s23 }
  0x47   : > { %s171_s25 = scalar_lea.vmem (!%p841_p8), [#allocation3], %s783_s23 }
  0x4d   : > { %599 = dma.done.wait (%p842_p13), %s169_s24, 16  }
  0x4e   : > { %601 = vsyncadd (%p842_p13), %s169_s24, 4294967280  ;;  %s432_s29 = sshll.u32 %s783_s23, 1  ;;  %s177_s27 = scalar_lea.sflag [#allocation6], %s783_s23 }
  0x4f   : > { %s180_s19 = scalar_lea.vmem [#allocation5], %s432_s29 }
  0x50   : > { %603 = dma.done.wait (%p842_p13), %s177_s27, 32  }
  0x51   : > { %605 = vsyncadd (%p842_p13), %s177_s27, 4294967264  ;;  %v212_v0 = vld [vmem:[%s180_s19] sm:$0x3]  ;;  %vm215_vm0 = vcmask 1041408   ;;  %v632_v1 = vmov 0.0   ;;  %vm210_vm7 = vcmask 40960  }
  0x52   : > { %vm240_vm1 = vcmp.eq.s32.totalorder %v212_v0, 2  ;;  %vm213_vm2 = vcmp.eq.s32.totalorder %v212_v0, 0  ;;  %vm253_vm3 = vcmp.eq.s32.totalorder %v212_v0, 3  ;;  %vm227_vm4 = vcmp.eq.s32.totalorder %v212_v0, 1  ;;  %211 = vst.msk [vmem:[#allocation2] sm:$0x1] %vm210_vm7, %v632_v1 }
  0x53   : > { %v241_v2 = vsel %vm240_vm1, 1.0, %v632_v1  ;;  %v214_v3 = vsel %vm213_vm2, 1.0, %v632_v1  ;;  %v254_v4 = vsel %vm253_vm3, 1.0, %v632_v1  ;;  %v228_v5 = vsel %vm227_vm4, 1.0, %v632_v1  ;;  %v309_v56 = vld [vmem:[%s171_s25] sm:$0x1] }
  0x54   : > { %v242_v6 = vsel %vm215_vm0, %v241_v2, -inf  ;;  %v216_v7 = vsel %vm215_vm0, %v214_v3, -inf  ;;  %vm279_vm5 = vcmp.eq.s32.totalorder %v212_v0, 5  ;;  %vm266_vm6 = vcmp.eq.s32.totalorder %v212_v0, 4  ;;  %p203_p7 = scmp.lt.s32.totalorder %s620_s12, 1 }
  0x55   : > { %243 = vmax.xlane.f32.xlu1 %v242_v6  ;;  %217 = vmax.xlane.f32.xlu0 %v216_v7  ;;  %v255_v8 = vsel %vm215_vm0, %v254_v4, -inf  ;;  %v229_v9 = vsel %vm215_vm0, %v228_v5, -inf  ;;  %v280_v10 = vsel %vm279_vm5, 1.0, %v632_v1  ;;  %v267_v11 = vsel %vm266_vm6, 1.0, %v632_v1 }
  0x56   : > { %v281_v12 = vsel %vm215_vm0, %v280_v10, -inf  ;;  %v268_v13 = vsel %vm215_vm0, %v267_v11, -inf  ;;  %v314_v57 = vsub.f32 1.0, %v309_v56  ;;  %510 = vlog2.f32 %v309_v56  ;;  %s851_s12 = smov (!%p203_p7, %s620_s12), 1 }
  0x57   : > { %vm293_vm8 = vcmask 7168   ;;  %vm295_vm9 = vcmask 15360   ;;  %vm297_vm10 = vcmask 23552   ;;  %vm299_vm11 = vcmask 31744   ;;  %s205_s7 = scalar_lea.vmem %s833_s2, %s851_s12 }
  0x58   : > { %512 = vlog2.f32 %v314_v57  ;;  %vm301_vm12 = vcmask 39936   ;;  %vm334_vm13 = vcmask 0  }
  0x59   : > { %256 = vmax.xlane.f32.xlu1 %v255_v8  ;;  %230 = vmax.xlane.f32.xlu0 %v229_v9  ;;  %v292_v2 = vld [vmem:[#allocation2] sm:$0x1] }
  0x5d   : > { %282 = vmax.xlane.f32.xlu1 %v281_v12  ;;  %269 = vmax.xlane.f32.xlu0 %v268_v13 }
  0x60   : > { %v511_v6 = vpop.eup %510 }
  0x61   : > { %v312_v9 = vmul.f32 0.6931472, %v511_v6 }
  0x62   : > { %v513_v8 = vpop.eup %512 }
  0x63   : > { %v316_v10 = vmul.f32 0.6931472, %v513_v8  ;;  %v313_v11 = vmax.f32 %v312_v9, -100.0 }
  0x65   : > { %v317_v12 = vmax.f32 %v316_v10, -100.0 }
  0xe2   : > { %v244_v14 = vpop.xlane.xlu1 %243  ;;  %v218_v15 = vpop.xlane.xlu0 %217 }
  0xe3   : > { %v245_v16 = vrot.slane %v244_v14, 4  ;;  %v219_v17 = vrot.slane %v218_v15, 4 }
  0xe5   : > { %v246_v18 = vmax.f32 %v244_v14, %v245_v16  ;;  %v220_v19 = vmax.f32 %v218_v15, %v219_v17 }
  0xe6   : > { %v257_v20 = vpop.xlane.xlu1 %256  ;;  %v231_v21 = vpop.xlane.xlu0 %230 }
  0xe7   : > { %v247_v22 = vrot.slane %v246_v18, 2  ;;  %v221_v23 = vrot.slane %v220_v19, 2  ;;  %v258_v24 = vrot.slane %v257_v20, 4  ;;  %v232_v25 = vrot.slane %v231_v21, 4 }
  0xe9   : > { %v259_v26 = vmax.f32 %v257_v20, %v258_v24  ;;  %v233_v27 = vmax.f32 %v231_v21, %v232_v25  ;;  %v222_v28 = vmax.f32 %v220_v19, %v221_v23  ;;  %v248_v31 = vmax.f32 %v246_v18, %v247_v22 }
  0xea   : > { %v283_v29 = vpop.xlane.xlu1 %282  ;;  %v270_v30 = vpop.xlane.xlu0 %269 }
  0xeb   : > { %v260_v32 = vrot.slane %v259_v26, 2  ;;  %v234_v33 = vrot.slane %v233_v27, 2  ;;  %v284_v34 = vrot.slane %v283_v29, 4  ;;  %v271_v35 = vrot.slane %v270_v30, 4 }
  0xec   : > { %v223_v36 = vrot.slane %v222_v28, 1  ;;  %v249_v42 = vrot.slane %v248_v31, 1 }
  0xed   : > { %v285_v37 = vmax.f32 %v283_v29, %v284_v34  ;;  %v272_v38 = vmax.f32 %v270_v30, %v271_v35  ;;  %v235_v39 = vmax.f32 %v233_v27, %v234_v33  ;;  %v261_v40 = vmax.f32 %v259_v26, %v260_v32 }
  0xee   : > { %v224_v41 = vmax.f32 %v222_v28, %v223_v36  ;;  %v250_v51 = vmax.f32 %v248_v31, %v249_v42 }
  0xef   : > { %v286_v43 = vrot.slane %v285_v37, 2  ;;  %v273_v44 = vrot.slane %v272_v38, 2  ;;  %v236_v45 = vrot.slane %v235_v39, 1  ;;  %v262_v46 = vrot.slane %v261_v40, 1 }
  0xf0   : > { %435 = vpush %v224_v41 }
  0xf1   : > { %v287_v47 = vmax.f32 %v285_v37, %v286_v43  ;;  %v237_v48 = vmax.f32 %v235_v39, %v236_v45  ;;  %v263_v49 = vmax.f32 %v261_v40, %v262_v46  ;;  %v274_v50 = vmax.f32 %v272_v38, %v273_v44 }
  0xf3   : > { %437 = vpush %v237_v48  ;;  %v275_v52 = vrot.slane %v274_v50, 1  ;;  %v288_v53 = vrot.slane %v287_v47, 1 }
  0xf4   : > { %439 = vpush %v250_v51 }
  0xf5   : > { %441 = vpush %v263_v49  ;;  %v276_v54 = vmax.f32 %v274_v50, %v275_v52  ;;  %v289_v55 = vmax.f32 %v287_v47, %v288_v53 }
  0xf7   : > { %443 = vpush %v276_v54 }
  0xf8   : > { %445 = vpush %v289_v55 }
 0x121   : > { %s436_s20 = spop %435 }
 0x122   : > { %v226_v58 = vstv %s436_s20 }
 0x124   : > { %s438_s3 = spop %437 }
 0x125   : > { %v239_v59 = vstv %s438_s3  ;;  %s440_s4 = spop %439 }
 0x126   : > { %v294_v60 = vsel %vm293_vm8, %v226_v58, %v239_v59  ;;  %v252_v61 = vstv %s440_s4  ;;  %s442_s5 = spop %441 }
 0x127   : > { %v296_v62 = vsel %vm295_vm9, %v294_v60, %v252_v61  ;;  %v265_v63 = vstv %s442_s5 }
 0x128   : > { %v298_v0 = vsel %vm297_vm10, %v296_v62, %v265_v63  ;;  %s444_s26 = spop %443 }
 0x129   : > { %v278_v1 = vstv %s444_s26  ;;  %s446_s28 = spop %445 }
 0x12a   : > { %v300_v3 = vsel %vm299_vm11, %v298_v0, %v278_v1  ;;  %v291_v4 = vstv %s446_s28 }
 0x12b   : > { %v302_v5 = vsel %vm301_vm12, %v300_v3, %v291_v4 }
 0x12c   : > { %v303_v7 = vmax.f32 %v292_v2, %v302_v5 }
 0x12e   : > { %305 = vst.msk [vmem:[#allocation2] sm:$0x1] %vm210_vm7, %v303_v7 }
 0x135   : > { %v310_v13 = vld [vmem:[#allocation2] sm:$0x1] }
 0x136   : > { %v319_v14 = vsub.f32 1.0, %v310_v13  ;;  %v318_v15 = vmul.f32 %v313_v11, %v310_v13 }
 0x138   : > { %v320_v16 = vmul.f32 %v319_v14, %v317_v12 }
 0x13a   : > { %v321_v17 = vadd.f32 %v320_v16, %v318_v15 }
 0x13c   : > { %v322_v18 = vsub.f32 0.0, %v321_v17 }
 0x13e   : > { %v323_v19 = vsel %vm210_vm7, %v322_v18, 0.0 }
 0x13f   : > { %324 = vadd.xlane.f32.xlu0 %v323_v19 }
 0x1cc   : > { %v325_v20 = vpop.xlane.xlu0 %324 }
 0x1cd   : > { %v326_v21 = vrot.slane %v325_v20, 4 }
 0x1cf   : > { %v327_v22 = vadd.f32 %v326_v21, %v325_v20 }
 0x1d1   : > { %v328_v23 = vrot.slane %v327_v22, 2 }
 0x1d3   : > { %v329_v24 = vadd.f32 %v328_v23, %v327_v22 }
 0x1d5   : > { %v330_v25 = vrot.slane %v329_v24, 1 }
 0x1d7   : > { %v331_v26 = vadd.f32 %v330_v25, %v329_v24 }
 0x1d9   : > { %447 = vpush %v331_v26 }
 0x20a   : > { %s448_s8 = spop %447 }
 0x20b   : > { %v333_v27 = vstv %s448_s8 }
 0x20c   : > { %335 = vst.msk [vmem:[%s205_s7] sm:$0x1] %vm334_vm13, %v333_v27 }
 0x20d PF: > { %s18_s14 = sadd.s32 1, %s628_s14   ;;  %s843_s9 = smov %s612_s10 }
 0x20e   : > { %p15_p9 = scmp.ge.s32.totalorder %s18_s14, 4   ;;  %s844_s10 = smov %s616_s11 }
 0x20f   : > { %s845_s11 = smov %s697_s21  ;;  %s846_s12 = smov %s624_s13 }
 0x210   : > { %s847_s13 = smov %s849_s16  ;;  %17 = sbr.rel (!%p15_p9) target bundleno = 6 (0x6), region = 89 }
 0x217   :  { %353 = vsyncpa [#allocation4], 1 }
 0x218   :  { %355 = vsyncpa [#allocation4 + $0x1], 1 }
 0x219   :  { %356 = vsyncpa [#allocation6], 1 }
 0x21a   :  { %358 = vsyncpa [#allocation6 + $0x1], 1 }

</bundles_post_ra>
